<compile_context>
chip_gen: v7x
topology: tpu7x:2x2x1
jax: 0.10.0
libtpu: 0.0.40
codegen_flags: <defaults>
</compile_context>

<pallas_src>
import jax
import jax.numpy as jnp
from jax import lax
from jax.experimental import pallas as pl
from jax.experimental.pallas import tpu as pltpu


def _round_up(x, m):
    return ((x + m - 1) // m) * m


def _vmem_capacity_bytes():
    try:
        info = pltpu.get_tpu_info()
        return int(getattr(info, "vmem_capacity_bytes", 128 << 20))
    except Exception:
        return 128 << 20


def _pick_block_rows(B, V, itemsize, vmem_cap, max_rows=1024):
    """Largest row tile whose double-buffered logits + live f32 intermediates
    stay within half of this chip's VMEM (generation-aware via vmem_cap)."""
    per_elem = 2 * itemsize + 5 * 4            # 2x buffered logits + ~5 f32 temps
    budget = vmem_cap // 2                     # leave half of VMEM as headroom
    br = budget // max(1, per_elem * V)
    br = max(16, (br // 16) * 16)              # multiple of 16 (bf16 (16,128) tiling)
    br = min(br, max_rows, _round_up(B, 16))
    return int(br)


# ----------------------------------------------------------------------------
# Fused kernel: per row block compute
#   T_i = w_r1*sum(x) + w_r2*sum(member*x) + w_r3*x[tgt] + w_l0*x[0]
#         + w_lp*x[pad] + w_lse*lse          ( == sum_v log_softmax(x)*prob )
# and write the (negated) block partial to its own output slot.
# ----------------------------------------------------------------------------
def _make_kernel(B, V, L, TB, pad_col):
    def kernel(logits_ref, tab_ref, out_ref):
        r0 = pl.program_id(0) * TB
        row_ids = r0 + lax.broadcasted_iota(jnp.int32, (TB, 1), 0)
        valid = row_ids < B                          # ragged last block only

        tab = tab_ref[...]                           # (TB, L+7) f32
        tgt = tab[:, L:L + 1].astype(jnp.int32)      # (TB, 1)
        w_r1 = tab[:, L + 1:L + 2]
        w_r2 = tab[:, L + 2:L + 3]
        w_r3 = tab[:, L + 3:L + 4]
        w_l0 = tab[:, L + 4:L + 5]
        w_lp = tab[:, L + 5:L + 6]
        w_lse = tab[:, L + 6:L + 7]

        x = logits_ref[...].astype(jnp.float32)      # (TB, V)

        # stable log-sum-exp per row (reductions go to the XLU, exp to the EUP)
        m = jnp.max(x, axis=-1, keepdims=True)
        lse = jnp.log(jnp.sum(jnp.exp(x - m), axis=-1, keepdims=True)) + m

        # member mask: classes scattered to `confidence` by the origin columns
        classes = lax.broadcasted_iota(jnp.int32, (TB, V), 1)
        member = classes == tab[:, 0:1].astype(jnp.int32)
        for j in range(1, L):                        # L is small & static
            member = member | (classes == tab[:, j:j + 1].astype(jnp.int32))

        sum_x = jnp.sum(x, axis=-1, keepdims=True)                            # (TB,1)
        sum_mx = jnp.sum(jnp.where(member, x, 0.0), axis=-1, keepdims=True)    # (TB,1)
        x_tgt = jnp.sum(jnp.where(classes == tgt, x, 0.0), axis=-1,
                        keepdims=True)                                         # (TB,1)
        x_0 = x[:, 0:1]                                                        # (TB,1)
        x_p = x[:, pad_col:pad_col + 1]                                        # (TB,1)

        contrib = (w_r1 * sum_x + w_r2 * sum_mx + w_r3 * x_tgt
                   + w_l0 * x_0 + w_lp * x_p + w_lse * lse)                    # (TB,1)
        # single cheap per-row select kills OOB / duplicated-row garbage (incl.
        # any NaN/Inf produced from unspecified padding data)
        contrib = jnp.where(valid, contrib, 0.0)

        total = jnp.sum(contrib, axis=0, keepdims=True)                        # (1,1)
        out_ref[...] = (-total).reshape(1, 1, 1)

    return kernel


def smoothed_kl_loss_fused(output, tab, *, pad_col, block_rows=None):
    """loss = -sum(log_softmax(output, -1) * model_prob(row tables))."""
    B, V = output.shape
    W = tab.shape[1]
    L = W - 7
    itemsize = jnp.dtype(output.dtype).itemsize

    vmem_cap = _vmem_capacity_bytes()
    if block_rows is None:
        block_rows = _pick_block_rows(B, V, itemsize, vmem_cap)
    assert block_rows % 16 == 0

    n_blocks = pl.cdiv(B, block_rows)
    kernel = _make_kernel(B, V, L, block_rows, pad_col)

    # VMEM: double-buffered logits + table blocks + ~5 live (TB,V) f32 temps.
    footprint = (2 * block_rows * V * itemsize
                 + 5 * block_rows * V * 4
                 + 2 * block_rows * W * 4
                 + (2 << 20))
    vmem_limit = int(min(vmem_cap, max(16 << 20, int(1.25 * footprint))))

    partials = pl.pallas_call(
        kernel,
        out_shape=jax.ShapeDtypeStruct((n_blocks, 1, 1), jnp.float32),
        grid_spec=pltpu.PrefetchScalarGridSpec(
            num_scalar_prefetch=0,
            grid=(n_blocks,),
            in_specs=[
                pl.BlockSpec((block_rows, V), lambda i: (i, 0)),   # logits
                pl.BlockSpec((block_rows, W), lambda i: (i, 0)),   # row table
            ],
            out_specs=pl.BlockSpec((1, 1, 1), lambda i: (i, 0, 0)),
        ),
        compiler_params=pltpu.CompilerParams(
            dimension_semantics=("parallel",),
            vmem_limit_bytes=vmem_limit),
    )(output, tab)
    return jnp.sum(partials)


# ----------------------------------------------------------------------------
# Module port
# ----------------------------------------------------------------------------
class LabelSmoothingLoss:
    """JAX/Pallas port of model/util/Loss.py::LabelSmoothingLoss."""

    def __init__(self, label_smoothing, tgt_dict_size, padding_idx=-100):
        assert 0.0 <= label_smoothing <= 1.0
        self.padding_idx = padding_idx
        self.tgt_dict_size = tgt_dict_size
        self.smoothing_value = label_smoothing / (tgt_dict_size - 2)
        self.confidence = 1.0 - label_smoothing
        # NOTE: negative padding_idx wraps for the one_hot zeroing (same as
        # torch negative indexing) while the row padding mask compares the
        # literal value -- intentional mirror of the PyTorch original.
        one_hot = jnp.full((tgt_dict_size,), self.smoothing_value,
                           dtype=jnp.float32)
        one_hot = one_hot.at[self.padding_idx].set(0.0)
        self.one_hot = one_hot[None, :]              # kept for parity/reference
        self._pad_col = self.padding_idx % tgt_dict_size   # wrapped column

    def _row_tables(self, target, shard_size, batch, part, now):
        """One (B, L+7) f32 table: origin cols | target | 6 per-row weights."""
        B = target.shape[0]
        V = self.tgt_dict_size
        S = self.smoothing_value
        C = self.confidence
        pad_col = self._pad_col
        pad_lit = self.padding_idx

        target_len = jnp.asarray(batch['target_len'])
        origin = jnp.asarray(batch['origin'])
        L = origin.shape[1]

        i = jnp.arange(B)
        temp = now * shard_size + i // part                       # (B,)
        row_mod = i % part
        tlen = target_len[row_mod].astype(jnp.int32)              # (B,)
        active = temp < (tlen - 2)                                # (B,)
        denom = (tlen - temp - 2).astype(jnp.float32)
        invd = jnp.where(active, 1.0 / jnp.where(active, denom, 1.0), 1.0)

        org = origin[row_mod].astype(jnp.int32)                   # (B, L)
        jcol = jnp.arange(L)[None, :]
        # columns scattered to `confidence`; -1 = none.  Class 0 is dropped
        # here because the torch code re-zeroes row[0] right after the scatter,
        # which removes the class-0 select from the kernel.
        cols = jnp.where((jcol >= temp[:, None]) & active[:, None] & (org != 0),
                         org, -1)

        # distinct member count per row (duplicate origin entries count once)
        idx = jnp.arange(L)
        earlier = idx[None, :, None] > idx[None, None, :]         # (1, L, L)
        dup = jnp.any((cols[:, :, None] == cols[:, None, :]) & earlier, axis=-1)
        cnt = jnp.sum((cols >= 0) & (~dup), axis=-1).astype(jnp.float32)

        tgt = target.astype(jnp.int32)
        member_tgt = jnp.any(cols == tgt[:, None], axis=-1)
        member_pad = jnp.any(cols == pad_col, axis=-1)

        oh_tgt = jnp.where(tgt == pad_col, 0.0, S)                # one_hot[tgt]
        base_tgt = jnp.where(tgt == 0, 0.0,
                             jnp.where(member_tgt, C, oh_tgt))
        pre_tgt = jnp.where(active, invd * base_tgt, oh_tgt)      # prob before scatter

        # padding column only needs an explicit correction when it is not class
        # 0 and was not hit by the origin scatter
        if pad_col != 0:
            q = jnp.where(member_pad, 0.0, 1.0)
        else:
            q = jnp.zeros((B,), jnp.float32)

        w_r1 = jnp.where(active, S * invd, S)
        w_r2 = jnp.where(active, (C - S) * invd, 0.0)
        w_l0 = jnp.where(active, -S * invd, 0.0)
        w_lp = jnp.where(active, -S * invd * q, -S)
        w_r3 = C - pre_tgt

        rowmask = (tgt != pad_lit).astype(jnp.float32)            # padding rows -> 0
        w_r1 = w_r1 * rowmask
        w_r2 = w_r2 * rowmask
        w_r3 = w_r3 * rowmask
        w_l0 = w_l0 * rowmask
        w_lp = w_lp * rowmask
        # -lse * sum(model_prob) folded into one weight: log p is never built
        w_lse = -(V * w_r1 + cnt * w_r2 + w_r3 + w_l0 + w_lp)

        tab = jnp.concatenate(
            [cols.astype(jnp.float32),
             tgt.astype(jnp.float32)[:, None],
             w_r1[:, None], w_r2[:, None], w_r3[:, None],
             w_l0[:, None], w_lp[:, None], w_lse[:, None]], axis=1)
        return tab.astype(jnp.float32)                            # (B, L+7)

    def __call__(self, output, target, shard_size, batch, part, now):
        tab = self._row_tables(target, shard_size, batch, part, now)
        return smoothed_kl_loss_fused(output, tab, pad_col=self._pad_col)


# ----------------------------------------------------------------------------
# Pure-JAX reference (mirrors the PyTorch loop) — used only for the self-test.
# ----------------------------------------------------------------------------
def _reference_loss(crit, output, target, shard_size, batch, part, now):
    B = target.shape[0]
    V = crit.tgt_dict_size
    target_len = jnp.asarray(batch['target_len'])
    origin = jnp.asarray(batch['origin'])
    L = origin.shape[1]

    i = jnp.arange(B)
    temp = now * shard_size + i // part
    row_mod = i % part
    tlen = target_len[row_mod]
    active = temp < (tlen - 2)

    org = origin[row_mod]
    valid_j = jnp.arange(L)[None, :] >= temp[:, None]
    classes = jnp.arange(V)
    member = jnp.any((org[:, :, None] == classes[None, None, :])
                     & valid_j[:, :, None], axis=1)

    base = jnp.broadcast_to(crit.one_hot, (B, V))
    row = jnp.where(member, crit.confidence, base)
    row = row.at[:, 0].set(0.0)
    denom = tlen.astype(jnp.float32) - temp.astype(jnp.float32) - 2.0
    row = row / jnp.where(active, denom, 1.0)[:, None]
    model_prob = jnp.where(active[:, None], row, base)
    model_prob = jnp.where(classes[None, :] == target[:, None],
                           crit.confidence, model_prob)
    model_prob = jnp.where((target == crit.padding_idx)[:, None],
                           0.0, model_prob)
    return -jnp.sum(jax.nn.log_softmax(output, axis=-1) * model_prob)


# ----------------------------------------------------------------------------
if __name__ == "__main__":
    key = jax.random.PRNGKey(0)
    k1, k2, k3 = jax.random.split(key, 3)

    V = 128            # tgt_dict_size
    part = 4           # sequences in the batch dict
    shard_size = 4
    now = 0
    B = shard_size * part   # 16 rows in this shard
    L = 6                   # (padded) length of each 'origin' row

    output = jax.random.normal(k1, (B, V), dtype=jnp.float32)
    target = jax.random.randint(k2, (B,), 1, V)
    target = target.at[3].set(0).at[7].set(0)        # padding rows (pidx=0 case)
    origin = jax.random.randint(k3, (part, L), 1, V)
    origin = origin.at[2, 1].set(0)                  # class-0 scatter (no-op path)
    origin = origin.at[0, 4].set(origin[0, 3])       # duplicated origin column
    target_len = jnp.array([5, 3, 8, 2], dtype=jnp.int32)
    batch = {'target_len': target_len, 'origin': origin}

    # config 1: padding_idx = 0 -> rows whose target is 0 are zeroed out
    crit = LabelSmoothingLoss(label_smoothing=0.1, tgt_dict_size=V, padding_idx=0)
    loss = jax.block_until_ready(crit(output, target, shard_size, batch, part, now))
    ref = _reference_loss(crit, output, target, shard_size, batch, part, now)
    assert jnp.allclose(loss, ref, rtol=1e-3, atol=1e-3), (loss, ref)

    # config 2: default padding_idx = -100 (wraps to column V-100 for one_hot)
    crit2 = LabelSmoothingLoss(label_smoothing=0.1, tgt_dict_size=V, padding_idx=-100)
    loss2 = jax.block_until_ready(crit2(output, target, shard_size, batch, part, now))
    ref2 = _reference_loss(crit2, output, target, shard_size, batch, part, now)
    assert jnp.allclose(loss2, ref2, rtol=1e-3, atol=1e-3), (loss2, ref2)

    print("KERNEL_OK")
</pallas_src>

<mosaic_0001>
module attributes {stable_mosaic.version = 11 : i64} {
  func.func @kernel(%arg0: i32, %arg1: memref<16x128xf32, #tpu.memory_space<vmem>>, %arg2: memref<16x13xf32, #tpu.memory_space<vmem>>, %arg3: memref<1x1x1xf32, #tpu.memory_space<vmem>>) attributes {dimension_semantics = [#tpu.dimension_semantics<parallel>], iteration_bounds = array<i64: 1>, scalar_prefetch = 0 : i64, scratch_operands = 0 : i64, tpu.core_type = #tpu.core_type<tc>, window_params = [{transform_indices = @transform_0, window_bounds = array<i64: 16, 128>}, {transform_indices = @transform_1, window_bounds = array<i64: 16, 13>}, {transform_indices = @transform_2, window_bounds = array<i64: 1, 1, 1>}]} {
    %c16_i32 = arith.constant 16 : i32
    %0 = arith.muli %arg0, %c16_i32 : i32
    %1 = tpu.iota {dimensions = array<i32: 0>} : vector<16x1xi32>
    %2 = vector.broadcast %0 : i32 to vector<16x1xi32>
    %3 = arith.addi %2, %1 : vector<16x1xi32>
    %c16_i32_0 = arith.constant 16 : i32
    %4 = vector.broadcast %c16_i32_0 : i32 to vector<16x1xi32>
    %5 = arith.cmpi slt, %3, %4 : vector<16x1xi32>
    %c0 = arith.constant 0 : index
    %c0_1 = arith.constant 0 : index
    %6 = vector.load %arg2[%c0, %c0_1] : memref<16x13xf32, #tpu.memory_space<vmem>>, vector<16x13xf32>
    %7 = vector.extract_strided_slice %6 {offsets = [0, 6], sizes = [16, 1], strides = [1, 1]} : vector<16x13xf32> to vector<16x1xf32>
    %8 = arith.fptosi %7 : vector<16x1xf32> to vector<16x1xi32>
    %9 = vector.extract_strided_slice %6 {offsets = [0, 7], sizes = [16, 1], strides = [1, 1]} : vector<16x13xf32> to vector<16x1xf32>
    %10 = vector.extract_strided_slice %6 {offsets = [0, 8], sizes = [16, 1], strides = [1, 1]} : vector<16x13xf32> to vector<16x1xf32>
    %11 = vector.extract_strided_slice %6 {offsets = [0, 9], sizes = [16, 1], strides = [1, 1]} : vector<16x13xf32> to vector<16x1xf32>
    %12 = vector.extract_strided_slice %6 {offsets = [0, 10], sizes = [16, 1], strides = [1, 1]} : vector<16x13xf32> to vector<16x1xf32>
    %13 = vector.extract_strided_slice %6 {offsets = [0, 11], sizes = [16, 1], strides = [1, 1]} : vector<16x13xf32> to vector<16x1xf32>
    %14 = vector.extract_strided_slice %6 {offsets = [0, 12], sizes = [16, 1], strides = [1, 1]} : vector<16x13xf32> to vector<16x1xf32>
    %c0_2 = arith.constant 0 : index
    %c0_3 = arith.constant 0 : index
    %15 = vector.load %arg1[%c0_2, %c0_3] : memref<16x128xf32, #tpu.memory_space<vmem>>, vector<16x128xf32>
    %cst = arith.constant dense<0xFF800000> : vector<16xf32>
    %16 = vector.multi_reduction <maximumf>, %15, %cst [1] : vector<16x128xf32> to vector<16xf32>
    %17 = vector.shape_cast %16 : vector<16xf32> to vector<16x1xf32>
    %18 = vector.broadcast %17 : vector<16x1xf32> to vector<16x128xf32>
    %19 = arith.subf %15, %18 : vector<16x128xf32>
    %20 = math.exp %19 : vector<16x128xf32>
    %cst_4 = arith.constant dense<0.000000e+00> : vector<16xf32>
    %21 = vector.multi_reduction <add>, %20, %cst_4 [1] : vector<16x128xf32> to vector<16xf32>
    %22 = vector.shape_cast %21 : vector<16xf32> to vector<16x1xf32>
    %23 = math.log %22 : vector<16x1xf32>
    %24 = arith.addf %23, %17 : vector<16x1xf32>
    %25 = tpu.iota {dimensions = array<i32: 1>} : vector<16x128xi32>
    %26 = vector.extract_strided_slice %6 {offsets = [0, 0], sizes = [16, 1], strides = [1, 1]} : vector<16x13xf32> to vector<16x1xf32>
    %27 = arith.fptosi %26 : vector<16x1xf32> to vector<16x1xi32>
    %28 = vector.broadcast %27 : vector<16x1xi32> to vector<16x128xi32>
    %29 = arith.cmpi eq, %25, %28 : vector<16x128xi32>
    %30 = vector.extract_strided_slice %6 {offsets = [0, 1], sizes = [16, 1], strides = [1, 1]} : vector<16x13xf32> to vector<16x1xf32>
    %31 = arith.fptosi %30 : vector<16x1xf32> to vector<16x1xi32>
    %32 = vector.broadcast %31 : vector<16x1xi32> to vector<16x128xi32>
    %33 = arith.cmpi eq, %25, %32 : vector<16x128xi32>
    %34 = arith.ori %29, %33 : vector<16x128xi1>
    %35 = vector.extract_strided_slice %6 {offsets = [0, 2], sizes = [16, 1], strides = [1, 1]} : vector<16x13xf32> to vector<16x1xf32>
    %36 = arith.fptosi %35 : vector<16x1xf32> to vector<16x1xi32>
    %37 = vector.broadcast %36 : vector<16x1xi32> to vector<16x128xi32>
    %38 = arith.cmpi eq, %25, %37 : vector<16x128xi32>
    %39 = arith.ori %34, %38 : vector<16x128xi1>
    %40 = vector.extract_strided_slice %6 {offsets = [0, 3], sizes = [16, 1], strides = [1, 1]} : vector<16x13xf32> to vector<16x1xf32>
    %41 = arith.fptosi %40 : vector<16x1xf32> to vector<16x1xi32>
    %42 = vector.broadcast %41 : vector<16x1xi32> to vector<16x128xi32>
    %43 = arith.cmpi eq, %25, %42 : vector<16x128xi32>
    %44 = arith.ori %39, %43 : vector<16x128xi1>
    %45 = vector.extract_strided_slice %6 {offsets = [0, 4], sizes = [16, 1], strides = [1, 1]} : vector<16x13xf32> to vector<16x1xf32>
    %46 = arith.fptosi %45 : vector<16x1xf32> to vector<16x1xi32>
    %47 = vector.broadcast %46 : vector<16x1xi32> to vector<16x128xi32>
    %48 = arith.cmpi eq, %25, %47 : vector<16x128xi32>
    %49 = arith.ori %44, %48 : vector<16x128xi1>
    %50 = vector.extract_strided_slice %6 {offsets = [0, 5], sizes = [16, 1], strides = [1, 1]} : vector<16x13xf32> to vector<16x1xf32>
    %51 = arith.fptosi %50 : vector<16x1xf32> to vector<16x1xi32>
    %52 = vector.broadcast %51 : vector<16x1xi32> to vector<16x128xi32>
    %53 = arith.cmpi eq, %25, %52 : vector<16x128xi32>
    %54 = arith.ori %49, %53 : vector<16x128xi1>
    %cst_5 = arith.constant dense<0.000000e+00> : vector<16xf32>
    %55 = vector.multi_reduction <add>, %15, %cst_5 [1] : vector<16x128xf32> to vector<16xf32>
    %56 = vector.shape_cast %55 : vector<16xf32> to vector<16x1xf32>
    %cst_6 = arith.constant 0.000000e+00 : f32
    %57 = vector.broadcast %cst_6 : f32 to vector<16x128xf32>
    %58 = arith.select %54, %15, %57 : vector<16x128xi1>, vector<16x128xf32>
    %cst_7 = arith.constant dense<0.000000e+00> : vector<16xf32>
    %59 = vector.multi_reduction <add>, %58, %cst_7 [1] : vector<16x128xf32> to vector<16xf32>
    %60 = vector.shape_cast %59 : vector<16xf32> to vector<16x1xf32>
    %61 = vector.broadcast %8 : vector<16x1xi32> to vector<16x128xi32>
    %62 = arith.cmpi eq, %25, %61 : vector<16x128xi32>
    %cst_8 = arith.constant 0.000000e+00 : f32
    %63 = vector.broadcast %cst_8 : f32 to vector<16x128xf32>
    %64 = arith.select %62, %15, %63 : vector<16x128xi1>, vector<16x128xf32>
    %cst_9 = arith.constant dense<0.000000e+00> : vector<16xf32>
    %65 = vector.multi_reduction <add>, %64, %cst_9 [1] : vector<16x128xf32> to vector<16xf32>
    %66 = vector.shape_cast %65 : vector<16xf32> to vector<16x1xf32>
    %67 = vector.extract_strided_slice %15 {offsets = [0, 0], sizes = [16, 1], strides = [1, 1]} : vector<16x128xf32> to vector<16x1xf32>
    %68 = vector.extract_strided_slice %15 {offsets = [0, 0], sizes = [16, 1], strides = [1, 1]} : vector<16x128xf32> to vector<16x1xf32>
    %69 = arith.mulf %9, %56 : vector<16x1xf32>
    %70 = arith.mulf %10, %60 : vector<16x1xf32>
    %71 = arith.addf %69, %70 : vector<16x1xf32>
    %72 = arith.mulf %11, %66 : vector<16x1xf32>
    %73 = arith.addf %71, %72 : vector<16x1xf32>
    %74 = arith.mulf %12, %67 : vector<16x1xf32>
    %75 = arith.addf %73, %74 : vector<16x1xf32>
    %76 = arith.mulf %13, %68 : vector<16x1xf32>
    %77 = arith.addf %75, %76 : vector<16x1xf32>
    %78 = arith.mulf %14, %24 : vector<16x1xf32>
    %79 = arith.addf %77, %78 : vector<16x1xf32>
    %cst_10 = arith.constant 0.000000e+00 : f32
    %80 = vector.broadcast %cst_10 : f32 to vector<16x1xf32>
    %81 = arith.select %5, %79, %80 : vector<16x1xi1>, vector<16x1xf32>
    %cst_11 = arith.constant dense<0.000000e+00> : vector<1xf32>
    %82 = vector.multi_reduction <add>, %81, %cst_11 [0] : vector<16x1xf32> to vector<1xf32>
    %83 = vector.shape_cast %82 : vector<1xf32> to vector<1x1xf32>
    %cst_12 = arith.constant 0.000000e+00 : f32
    %84 = vector.broadcast %cst_12 : f32 to vector<1x1xf32>
    %85 = arith.subf %84, %83 : vector<1x1xf32>
    %86 = vector.shape_cast %85 : vector<1x1xf32> to vector<1x1x1xf32>
    %c0_13 = arith.constant 0 : index
    %c0_14 = arith.constant 0 : index
    %c0_15 = arith.constant 0 : index
    %87 = vector.load %arg3[%c0_13, %c0_14, %c0_15] : memref<1x1x1xf32, #tpu.memory_space<vmem>>, vector<1x1x1xf32>
    tpu.vector_store %arg3[%c0_13, %c0_14, %c0_15], %86 {strides = array<i32>} : memref<1x1x1xf32, #tpu.memory_space<vmem>>, vector<1x1x1xf32>,
    return
  }
  func.func @transform_0(%arg0: i32) -> (i32, i32) {
    %c0_i32 = arith.constant 0 : i32
    %c0_i32_0 = arith.constant 0 : i32
    return %arg0, %c0_i32 : i32, i32
  }
  func.func @transform_1(%arg0: i32) -> (i32, i32) {
    %c0_i32 = arith.constant 0 : i32
    %c0_i32_0 = arith.constant 0 : i32
    return %arg0, %c0_i32 : i32, i32
  }
  func.func @transform_2(%arg0: i32) -> (i32, i32, i32) {
    %c0_i32 = arith.constant 0 : i32
    %c0_i32_0 = arith.constant 0 : i32
    %c0_i32_1 = arith.constant 0 : i32
    return %arg0, %c0_i32, %c0_i32_0 : i32, i32, i32
  }
}

</mosaic_0001>

<bundles_post_ra>
// kernel: tpu_custom_call.1
= control target key start
LH: loop header
LB: loop body
LE: loop exit
PB: predicated region body
PF: predicated region fallthrough
CT: control target
= control target key end

     0   :  { %7 = vsyncpa [#allocation3], 0  ;;  %s500_s0 = inlined_call_operand.hbm [shape: f32[16,128], index: 0, kind: input, shape index: {}]   ;;  %s501_s1 = inlined_call_operand.hbm [shape: f32[16,13], index: 1, kind: input, shape index: {}]   ;;  %s502_s2 = inlined_call_operand.hbm [shape: f32[1,1,1], index: 2, kind: output, shape index: {}]  }
   0x1   :  { %8 = vsyncpa [#allocation6], 0 }
   0x2   :  { %9 = vsyncpa [#allocation4], 0  ;;  %s383_s9 = smov [#allocation2]   ;;  %s311_s13 = scalar_lea.hbm %s500_s0, 256 }
   0x3   :  { %s15_s10 = sshll.u32 %s383_s9, 4  ;;  %p312_p0 = scmp.ne.s32.totalorder %s500_s0, %s311_s13  ;;  %s16_s10 = int_to_ptr.vmem [resolvable:$true] %s15_s10 }
   0x4   :  { %p315_p1 = scmp.lt.u32.totalorder %s311_s13, %s500_s0 }
   0x6   :  { %p317_p2 = pnand %p315_p1, %p312_p0 }
   0x8   :  { %320 = shalt.err (!%p317_p2)
}
   0x9   :  { %s321_s18 = scalar_lea.vmem %s16_s10, 256  ;;  %p326_p4 = scmp.lt.s32.totalorder %s16_s10, %s16_s10 }
   0xa   :  { %p322_p3 = scmp.ne.s32.totalorder %s16_s10, %s321_s18  ;;  %p327_p5 = scmp.lt.s32.totalorder %s321_s18, %s321_s18 }
   0xc   :  { %p328_p6 = por %p327_p5, %p326_p4 }
   0xe   :  { %p329_p7 = pnand %p328_p6, %p322_p3 }
  0x10   :  { %332 = shalt.err (!%p329_p7)
}
  0x11   :  { %s384_s19 = smov 128   ;;  %s385_s20 = smov 8  }
  0x12   :  { %21 = dma.hbm_to_vmem [thread:$0]  %s500_s0, 256, %s16_s10, [#allocation3], %s384_s19, %s384_s19, %s385_s20  }
  0x13   :  { %s386_s23 = smov [#allocation5]   ;;  %s333_s27 = scalar_lea.hbm %s501_s1, 256 }
  0x14   :  { %s27_s24 = sshll.u32 %s386_s23, 4  ;;  %p334_p8 = scmp.ne.s32.totalorder %s501_s1, %s333_s27  ;;  %s28_s24 = int_to_ptr.vmem [resolvable:$true] %s27_s24 }
  0x15   :  { %p337_p9 = scmp.lt.u32.totalorder %s333_s27, %s501_s1 }
  0x17   :  { %p339_p10 = pnand %p337_p9, %p334_p8 }
  0x19   :  { %342 = shalt.err (!%p339_p10)
}
  0x1a   :  { %s343_s4 = scalar_lea.vmem %s28_s24, 256  ;;  %p348_p12 = scmp.lt.s32.totalorder %s28_s24, %s28_s24 }
  0x1b   :  { %p344_p11 = scmp.ne.s32.totalorder %s28_s24, %s343_s4  ;;  %p349_p13 = scmp.lt.s32.totalorder %s343_s4, %s343_s4 }
  0x1d   :  { %p350_p0 = por %p349_p13, %p348_p12 }
  0x1f   :  { %p351_p1 = pnand %p350_p0, %p344_p11 }
  0x21   :  { %354 = shalt.err (!%p351_p1)
}
  0x22   :  { %33 = dma.hbm_to_vmem [thread:$0]  %s501_s1, 256, %s28_s24, [#allocation6], %s384_s19, %s384_s19, %s385_s20  }
  0x23   :  { %377 = dma.done.wait [#allocation3], 256  }
  0x24   :  { %378 = vsyncadd [#allocation3], 4294967040 }
  0x25   :  { %379 = dma.done.wait [#allocation6], 256  }
  0x26   :  { %380 = vsyncadd [#allocation6], 4294967040  ;;  %v387_v0 = vmov 0   ;;  %v388_v1 = vmov 1   ;;  %v442_v2 = vld [vmem:[#allocation2] sm:$0xff]  ;;  %v444_v3 = vld [vmem:[#allocation5] sm:$0xff]  ;;  %v75_v26 = vlaneseq }
  0x27   :  { %294 = vset.pattern.permute.xlu1 %v387_v0  ;;  %295 = vset.pattern.permute.xlu0 %v388_v1  ;;  %v270_v4 = vtrunc.f32 %v444_v3  ;;  %v448_v5 = vld [vmem:[#allocation5 + $0x8] sm:$0xff]  ;;  %v450_v6 = vld [vmem:[#allocation2 + $0x8] sm:$0xff]  ;;  %v389_v10 = vmov 2   ;;  %v390_v11 = vmov 3   ;;  %v391_v12 = vmov 6   ;;  %s394_s1 = smov 10  }
  0x28   :  { %55 = vmax.xlane.f32.xlu0 %v442_v2  ;;  %v272_v7 = vtrunc.f32 %v448_v5  ;;  %v392_v13 = vmov 4   ;;  %v393_v14 = vmov 5   ;;  %v76_v29 = vand.u32 127, %v75_v26  ;;  %s395_s6 = smov 11   ;;  %s396_s7 = smov 125  }
  0x29   :  { %v271_v8 = vcvt.f32.s32 %v270_v4  ;;  %s397_s8 = smov 126   ;;  %s398_s9 = smov 127  }
  0x2a   :  { %v273_v9 = vcvt.f32.s32 %v272_v7  ;;  %s399_s10 = smov 124   ;;  %s400_s11 = smov 123  }
  0x2b   :  { %78 = vperm.xlu1 %294, %v271_v8   ;;  %s401_s12 = smov 121   ;;  %s402_s13 = smov [#allocation7]  }
  0x2c   :  { %57 = vmax.xlane.f32.xlu0 %v450_v6  ;;  %s260_s14 = sshll.u32 %s402_s13, 4  ;;  %s261_s14 = int_to_ptr.vmem [resolvable:$true] %s260_s14 }
  0x2d   :  { %s355_s15 = scalar_lea.vmem %s261_s14, 16  ;;  %s359_s16 = scalar_lea.vmem %s261_s14, 32 }
  0x2e   :  { %p356_p2 = scmp.ne.s32.totalorder %s261_s14, %s355_s15  ;;  %p360_p3 = scmp.lt.s32.totalorder %s261_s14, %s261_s14 }
  0x2f   :  { %81 = vperm.xlu1 %294, %v273_v9   ;;  %p361_p4 = scmp.lt.s32.totalorder %s359_s16, %s355_s15 }
  0x31   :  { %p362_p5 = por %p361_p4, %p360_p3 }
  0x33   :  { %296 = vset.pattern.permute.xlu1 %v388_v1  ;;  %p363_p6 = pnand %p362_p5, %p356_p2 }
  0x34   :  { %89 = vperm.xlu1 %296, %v273_v9  }
  0x38   :  { %297 = vset.pattern.permute.xlu1 %v389_v10 }
  0x39   :  { %96 = vperm.xlu1 %297, %v271_v8  }
  0x3d   :  { %99 = vperm.xlu1 %297, %v273_v9  }
  0x41   :  { %298 = vset.pattern.permute.xlu1 %v390_v11 }
  0x42   :  { %86 = vperm.xlu0 %295, %v271_v8   ;;  %106 = vperm.xlu1 %298, %v271_v8  }
  0x46   :  { %302 = vset.pattern.permute.xlu0 %v391_v12  ;;  %109 = vperm.xlu1 %298, %v273_v9  }
  0x4a   :  { %299 = vset.pattern.permute.xlu1 %v392_v13 }
  0x4b   :  { %116 = vperm.xlu1 %299, %v271_v8  }
  0x4f   :  { %119 = vperm.xlu1 %299, %v273_v9  }
  0x53   :  { %300 = vset.pattern.permute.xlu1 %v393_v14 }
  0x54   :  { %126 = vperm.xlu1 %300, %v271_v8  }
  0x58   :  { %129 = vperm.xlu1 %300, %v273_v9  }
  0x5c   :  { %301 = vset.pattern.permute.xlu1 %v391_v12 }
  0x5d   :  { %146 = vperm.xlu1 %301, %v271_v8  }
  0x61   :  { %149 = vperm.xlu1 %301, %v273_v9  }
  0x65   :  { %187 = vrot.lane.b32.xlu1 %v442_v2, %s394_s1 }
  0xaa   :  { %v79_v15 = vpop.permute.xlu1 %78 }
  0xab   :  { %vm83_vm1 = vcmp.eq.s32.totalorder %v76_v29, %v79_v15 }
  0xae   :  { %v82_v16 = vpop.permute.xlu1 %81 }
  0xaf   :  { %vm84_vm8 = vcmp.eq.s32.totalorder %v76_v29, %v82_v16 }
  0xb3   :  { %v90_v17 = vpop.permute.xlu1 %89 }
  0xb4   :  { %vm92_vm3 = vcmp.eq.s32.totalorder %v76_v29, %v90_v17 }
  0xb5   :  { %v456_v22 = vpop.xlane.xlu0 %55  ;;  %vm94_vm10 = vmor %vm84_vm8, %vm92_vm3 }
  0xb6   :  { %v59_v31 = vsub.f32 %v442_v2, %v456_v22 }
  0xb8   :  { %v97_v18 = vpop.permute.xlu1 %96  ;;  %v61_v33 = vmul.f32 1.442695, %v59_v31 }
  0xb9   :  { %v458_v25 = vpop.xlane.xlu0 %57  ;;  %vm101_vm4 = vcmp.eq.s32.totalorder %v76_v29, %v97_v18 }
  0xba   :  { %303 = vpow2.f32 %v61_v33  ;;  %v60_v40 = vsub.f32 %v450_v6, %v458_v25 }
  0xbc   :  { %v100_v19 = vpop.permute.xlu1 %99  ;;  %v63_v41 = vmul.f32 1.442695, %v60_v40 }
  0xbd   :  { %vm102_vm12 = vcmp.eq.s32.totalorder %v76_v29, %v100_v19 }
  0xbe   :  { %305 = vpow2.f32 %v63_v41 }
  0xc1   :  { %v107_v20 = vpop.permute.xlu1 %106  ;;  %v87_v28 = vpop.permute.xlu0 %86 }
  0xc2   :  { %vm91_vm0 = vcmp.eq.s32.totalorder %v76_v29, %v87_v28  ;;  %vm111_vm7 = vcmp.eq.s32.totalorder %v76_v29, %v107_v20 }
  0xc3   :  { %vm93_vm2 = vmor %vm83_vm1, %vm91_vm0 }
  0xc4   :  { %vm103_vm6 = vmor %vm93_vm2, %vm101_vm4  ;;  %v304_v39 = vpop.eup %303 }
  0xc5   :  { %v110_v21 = vpop.permute.xlu1 %109  ;;  %vm113_vm13 = vmor %vm103_vm6, %vm111_vm7  ;;  %vm237_vm7 = vcmask 64568  }
  0xc6   :  { %vm112_vm15 = vcmp.eq.s32.totalorder %v76_v29, %v110_v21  ;;  %vm104_vm4 = vmor %vm94_vm10, %vm102_vm12 }
  0xc7   :  { %vm114_vm3 = vmor %vm104_vm4, %vm112_vm15 }
  0xc8   :  { %v306_v42 = vpop.eup %305 }
  0xca   :  { %v117_v23 = vpop.permute.xlu1 %116 }
  0xcb   :  { %vm121_vm9 = vcmp.eq.s32.totalorder %v76_v29, %v117_v23 }
  0xcc   :  { %vm123_vm0 = vmor %vm113_vm13, %vm121_vm9  ;;  %vm252_vm9 = vcmask 0  }
  0xce   :  { %v120_v24 = vpop.permute.xlu1 %119 }
  0xcf   :  { %vm122_vm1 = vcmp.eq.s32.totalorder %v76_v29, %v120_v24 }
  0xd0   :  { %vm124_vm8 = vmor %vm114_vm3, %vm122_vm1 }
  0xd3   :  { %v127_v27 = vpop.permute.xlu1 %126 }
  0xd4   :  { %vm131_vm11 = vcmp.eq.s32.totalorder %v76_v29, %v127_v27 }
  0xd5   :  { %vm133_vm2 = vmor %vm123_vm0, %vm131_vm11 }
  0xd6   :  { %v139_v37 = vsel %vm133_vm2, %v442_v2, 0.0 }
  0xd7   :  { %v130_v30 = vpop.permute.xlu1 %129 }
  0xdc   :  { %v147_v32 = vpop.permute.xlu1 %146 }
  0xdd   :  { %vm151_vm5 = vcmp.eq.s32.totalorder %v76_v29, %v147_v32 }
  0xde   :  { %v153_v34 = vsel %vm151_vm5, %v442_v2, 0.0  ;;  %vm132_vm5 = vcmp.eq.s32.totalorder %v76_v29, %v130_v30 }
  0xdf   :  { %155 = vadd.xlane.f32.xlu1 %v153_v34  ;;  %vm134_vm6 = vmor %vm124_vm8, %vm132_vm5 }
  0xe0   :  { %v150_v35 = vpop.permute.xlu1 %149  ;;  %v140_v38 = vsel %vm134_vm6, %v450_v6, 0.0 }
  0xe1   :  { %vm152_vm14 = vcmp.eq.s32.totalorder %v76_v29, %v150_v35 }
  0xe2   :  { %v154_v36 = vsel %vm152_vm14, %v450_v6, 0.0 }
  0xe3   :  { %157 = vadd.xlane.f32.xlu0 %v154_v36 }
  0xe4   :  { %v188_v43 = vpop.permute.xlu1 %187 }
  0xe5   :  { %v193_v44 = vmul.f32 %v188_v43, %v444_v3 }
  0xe7   :  { %141 = vadd.xlane.f32.xlu0 %v139_v37 }
  0xeb   :  { %143 = vadd.xlane.f32.xlu0 %v140_v38 }
  0xef   :  { %65 = vadd.xlane.f32.xlu0 %v304_v39 }
  0xf0   :  { %205 = vrot.lane.b32.xlu1 %v442_v2, %s395_s6 }
 0x105   :  { %189 = vrot.lane.b32.xlu0 %v450_v6, %s394_s1 }
 0x114   :  { %67 = vadd.xlane.f32.xlu1 %v306_v42 }
 0x124   :  { %135 = vadd.xlane.f32.xlu0 %v442_v2 }
 0x125   :  { %207 = vrot.lane.b32.xlu1 %v450_v6, %s395_s6 }
 0x13a   :  { %197 = vrot.lane.b32.xlu0 %v193_v44, %s396_s7 }
 0x149   :  { %137 = vadd.xlane.f32.xlu1 %v450_v6 }
 0x16c   :  { %v156_v45 = vpop.xlane.xlu1 %155 }
 0x16d   :  { %v173_v46 = vmul.f32 %v156_v45, %v444_v3 }
 0x16f   :  { %177 = vrot.lane.b32.xlu0 %v173_v46, %s397_s8 }
 0x170   :  { %v158_v47 = vpop.xlane.xlu0 %157  ;;  %v206_v50 = vpop.permute.xlu1 %205 }
 0x171   :  { %v211_v52 = vmul.f32 %v206_v50, %v444_v3  ;;  %v174_v56 = vmul.f32 %v158_v47, %v448_v5 }
 0x174   :  { %v142_v48 = vpop.xlane.xlu0 %141 }
 0x175   :  { %v161_v49 = vmul.f32 %v142_v48, %v444_v3 }
 0x177   :  { %165 = vrot.lane.b32.xlu0 %v161_v49, %s398_s9 }
 0x178   :  { %v144_v51 = vpop.xlane.xlu0 %143 }
 0x179   :  { %v162_v59 = vmul.f32 %v144_v51, %v448_v5 }
 0x17b   :  { %215 = vrot.lane.b32.xlu0 %v211_v52, %s399_s10 }
 0x17c   :  { %v66_v53 = vpop.xlane.xlu0 %65 }
 0x17d   :  { %307 = vlog2.f32 %v66_v53 }
 0x180   :  { %v190_v54 = vpop.permute.xlu0 %189 }
 0x181   :  { %v194_v55 = vmul.f32 %v190_v54, %v448_v5 }
 0x183   :  { %199 = vrot.lane.b32.xlu1 %v194_v55, %s396_s7 }
 0x187   :  { %v308_v57 = vpop.eup %307  ;;  %179 = vrot.lane.b32.xlu1 %v174_v56, %s397_s8 }
 0x188   :  { %v70_v58 = vmul.f32 0.6931472, %v308_v57 }
 0x18a   :  { %v73_v60 = vadd.f32 %v70_v58, %v456_v22 }
 0x18b   :  { %167 = vrot.lane.b32.xlu1 %v162_v59, %s398_s9 }
 0x18c   :  { %v223_v61 = vmul.f32 %v73_v60, %v444_v3 }
 0x18e   :  { %227 = vrot.lane.b32.xlu0 %v223_v61, %s400_s11 }
 0x1a1   :  { %v68_v62 = vpop.xlane.xlu1 %67 }
 0x1a2   :  { %309 = vlog2.f32 %v68_v62 }
 0x1a5   :  { %v208_v63 = vpop.permute.xlu1 %207 }
 0x1a6   :  { %v212_v0 = vmul.f32 %v208_v63, %v448_v5 }
 0x1a8   :  { %217 = vrot.lane.b32.xlu1 %v212_v0, %s399_s10 }
 0x1ac   :  { %v310_v1 = vpop.eup %309 }
 0x1ad   :  { %v72_v2 = vmul.f32 0.6931472, %v310_v1 }
 0x1af   :  { %v74_v4 = vadd.f32 %v72_v2, %v458_v25 }
 0x1b1   :  { %v224_v6 = vmul.f32 %v74_v4, %v448_v5  ;;  %v136_v7 = vpop.xlane.xlu0 %135 }
 0x1b2   :  { %v159_v13 = vmul.f32 %v136_v7, %v444_v3 }
 0x1b3   :  { %229 = vrot.lane.b32.xlu1 %v224_v6, %s400_s11 }
 0x1b5   :  { %v198_v9 = vpop.permute.xlu0 %197 }
 0x1d6   :  { %v138_v8 = vpop.xlane.xlu1 %137 }
 0x1d7   :  { %v160_v16 = vmul.f32 %v138_v8, %v448_v5 }
 0x1e1   :  { %v178_v11 = vpop.permute.xlu0 %177 }
 0x1e9   :  { %v166_v14 = vpop.permute.xlu0 %165 }
 0x1ea   :  { %v171_v15 = vadd.f32 %v166_v14, %v159_v13 }
 0x1ec   :  { %v183_v18 = vadd.f32 %v178_v11, %v171_v15 }
 0x1ed   :  { %v216_v20 = vpop.permute.xlu0 %215 }
 0x1ee   :  { %v203_v21 = vadd.f32 %v198_v9, %v183_v18 }
 0x1f0   :  { %v221_v25 = vadd.f32 %v216_v20, %v203_v21 }
 0x1f5   :  { %v200_v10 = vpop.permute.xlu1 %199 }
 0x1f9   :  { %v180_v12 = vpop.permute.xlu1 %179 }
 0x1fd   :  { %v168_v17 = vpop.permute.xlu1 %167 }
 0x1fe   :  { %v172_v19 = vadd.f32 %v168_v17, %v160_v16 }
 0x200   :  { %v184_v22 = vadd.f32 %v180_v12, %v172_v19  ;;  %v228_v23 = vpop.permute.xlu0 %227 }
 0x201   :  { %v233_v27 = vadd.f32 %v228_v23, %v221_v25 }
 0x202   :  { %v204_v26 = vadd.f32 %v200_v10, %v184_v22 }
 0x203   :  { %v238_v3 = vsel %vm237_vm7, %v233_v27, 0.0 }
 0x21a   :  { %v218_v24 = vpop.permute.xlu1 %217 }
 0x21b   :  { %v222_v28 = vadd.f32 %v218_v24, %v204_v26 }
 0x225   :  { %v230_v29 = vpop.permute.xlu1 %229 }
 0x226   :  { %v234_v30 = vadd.f32 %v230_v29, %v222_v28 }
 0x228   :  { %v239_v31 = vsel %vm237_vm7, %v234_v30, 0.0 }
 0x229   :  { %v240_v32 = vadd.f32 %v239_v31, %v238_v3 }
 0x22b   :  { %v241_v33 = vrot.slane %v240_v32, 4 }
 0x22d   :  { %v242_v5 = vadd.f32 %v241_v33, %v240_v32 }
 0x22f   :  { %v243_v34 = vrot.slane %v242_v5, 2 }
 0x231   :  { %v244_v35 = vadd.f32 %v243_v34, %v242_v5 }
 0x233   :  { %v245_v36 = vrot.slane %v244_v35, 1 }
 0x235   :  { %v246_v37 = vadd.f32 %v245_v36, %v244_v35 }
 0x237   :  { %v247_v38 = vsub.f32 0.0, %v246_v37 }
 0x239   :  { %249 = vrot.lane.b32.xlu0 %v247_v38, %s401_s12 }
 0x2ab   :  { %v250_v39 = vpop.permute.xlu0 %249 }
 0x2ac   :  { %253 = vst.msk [vmem:[#allocation7] sm:$0x1] %vm252_vm9, %v250_v39 }
 0x2ad   :  { %366 = shalt.err (!%p363_p6)
}
 0x2ae   :  { %s367_s19 = scalar_lea.hbm %s502_s2, 16 }
 0x2af   :  { %p368_p7 = scmp.ne.s32.totalorder %s502_s2, %s367_s19  ;;  %p371_p8 = scmp.lt.u32.totalorder %s367_s19, %s502_s2 }
 0x2b1   :  { %p373_p9 = pnand %p371_p8, %p368_p7 }
 0x2b3   :  { %376 = shalt.err (!%p373_p9)
}
 0x2b4   :  { %263 = dma.vmem_to_hbm [thread:$0]  %s261_s14, 16, %s502_s2, [#allocation4]  }
 0x2b5   :  { %381 = dma.done.wait [#allocation4], 16  }
 0x2b6   :  { %382 = vsyncadd [#allocation4], 4294967280 }
 0x2b7   :  { %267 = vsyncpa [#allocation3], 1 }
 0x2b8   :  { %268 = vsyncpa [#allocation6], 1 }
 0x2b9   :  { %269 = vsyncpa [#allocation4], 1 }

</bundles_post_ra>
